<compile_context>
chip_gen: v7x
topology: tpu7x:2x2x1
jax: 0.10.0
libtpu: 0.0.40
codegen_flags: <defaults>
</compile_context>

<pallas_src>
import functools

import jax
import jax.numpy as jnp
from jax.experimental import pallas as pl
from jax.experimental.pallas import tpu as pltpu

H = 256              # per-head hidden width (fixed by ANN_V2)
F = 2 * H            # fused hidden width (actor | critic) = 512
OUT_W = 128          # lane-dense merged output width (col 0: value, cols 1..: probs)
ALIGN = 16           # bf16 sublane tile height -> align all slab row offsets to 16
MAX_BATCH_BLOCK = 512  # sweep 512/1024 for large-batch use; multiple of 8


def _round_up(n, m):
    return ((n + m - 1) // m) * m


def _slab_rows(k1):
    # [W1: k1] [W2-packed: 256] [W3-chunks: 128] [bias block: 16]
    return k1 + H + OUT_W + ALIGN


def _ann_v2_kernel(x_ref, p_ref, out_ref, *, k1):
    """Fused actor+critic MLP. bf16 MXU inputs, f32 accumulation, lane-dense output."""
    ow2 = k1              # W2 packed  [256, 512] : cols 0:256 actor, 256:512 critic
    ow3 = k1 + H          # W3 chunks  [128, 512] : chunk j at cols 128j:128(j+1)
    ob = k1 + H + OUT_W   # bias block : row0=b1, row1=b2, row2=b3 (cols 0:128)

    x = x_ref[...].astype(jnp.bfloat16)                           # [Bt, k1]

    b1 = p_ref[ob:ob + 1, :].astype(jnp.float32)                  # [1, 512]
    b2 = p_ref[ob + 1:ob + 2, :].astype(jnp.float32)              # [1, 512]
    b3 = p_ref[ob + 2:ob + 3, 0:OUT_W].astype(jnp.float32)        # [1, 128]

    # ---- Layer 1: [Bt,k1] @ [k1,512]  (actor cols 0:256 | critic cols 256:512) ----
    h1 = jnp.dot(x, p_ref[0:k1, :], preferred_element_type=jnp.float32) + b1
    h1 = jnp.maximum(h1, 0.0).astype(jnp.bfloat16)                # [Bt, 512]

    # ---- Layer 2: two independent 256-wide matmuls (block-diagonal, zeros removed) ----
    h2a = jnp.dot(h1[:, 0:H], p_ref[ow2:ow2 + H, 0:H],
                  preferred_element_type=jnp.float32) + b2[:, 0:H]
    h2c = jnp.dot(h1[:, H:F], p_ref[ow2:ow2 + H, H:F],
                  preferred_element_type=jnp.float32) + b2[:, H:F]
    h2a = jnp.maximum(h2a, 0.0).astype(jnp.bfloat16)              # [Bt, 256]
    h2c = jnp.maximum(h2c, 0.0).astype(jnp.bfloat16)              # [Bt, 256]

    # ---- Layer 3: four [Bt,128] x [128,128] K-chunks summed in f32 ----
    o = jnp.dot(h2a[:, 0:OUT_W], p_ref[ow3:ow3 + OUT_W, 0:OUT_W],
                preferred_element_type=jnp.float32)
    o += jnp.dot(h2a[:, OUT_W:H], p_ref[ow3:ow3 + OUT_W, OUT_W:2 * OUT_W],
                 preferred_element_type=jnp.float32)
    o += jnp.dot(h2c[:, 0:OUT_W], p_ref[ow3:ow3 + OUT_W, 2 * OUT_W:3 * OUT_W],
                 preferred_element_type=jnp.float32)
    o += jnp.dot(h2c[:, OUT_W:H], p_ref[ow3:ow3 + OUT_W, 3 * OUT_W:4 * OUT_W],
                 preferred_element_type=jnp.float32)
    o += b3
    out_ref[...] = o.astype(out_ref.dtype)


@functools.partial(jax.jit, static_argnames=("outputs",))
def ann_v2_forward(x, param_slab, outputs):
    """x: [B, inputs] f32, param_slab: bf16 slab from pack_params.

    Returns (value [B, 1], probs [B, outputs])."""
    B, inputs = x.shape
    k1 = _round_up(inputs, ALIGN)
    rows = param_slab.shape[0]
    assert rows == _slab_rows(k1), "param_slab does not match input width"

    bt = min(MAX_BATCH_BLOCK, _round_up(B, 8))
    bp = _round_up(B, bt)

    x_p = jnp.pad(x.astype(jnp.float32), ((0, bp - B), (0, k1 - inputs)))

    flops = 2 * bp * (k1 * F + 2 * H * H + F * OUT_W)
    bytes_accessed = (x_p.size * 4
                      + param_slab.size * param_slab.dtype.itemsize
                      + bp * OUT_W * 4)

    out = pl.pallas_call(
        functools.partial(_ann_v2_kernel, k1=k1),
        grid=(bp // bt,),
        in_specs=[
            pl.BlockSpec((bt, k1), lambda i: (i, 0)),       # activation tiles stream
            pl.BlockSpec((rows, F), lambda i: (0, 0)),      # bf16 weight slab stays resident
        ],
        out_specs=pl.BlockSpec((bt, OUT_W), lambda i: (i, 0)),
        out_shape=jax.ShapeDtypeStruct((bp, OUT_W), jnp.float32),
        compiler_params=pltpu.CompilerParams(
            dimension_semantics=("parallel",),
        ),
        cost_estimate=pl.CostEstimate(
            flops=flops, transcendentals=0, bytes_accessed=bytes_accessed),
    )(x_p, param_slab)

    value = out[:B, 0:1]
    probs = out[:B, 1:1 + outputs]
    return value, probs


def init_params(inputs, outputs, key=None):
    """nn.Linear-style init (U(+-1/sqrt(fan_in))); weights stored as [in, out]."""
    if key is None:
        key = jax.random.PRNGKey(0)
    dims = {
        "a1": (inputs, H), "a2": (H, H), "a3": (H, outputs),
        "c1": (inputs, H), "c2": (H, H), "c3": (H, 1),
    }
    params = {}
    keys = jax.random.split(key, 2 * len(dims))
    for i, (name, (fi, fo)) in enumerate(dims.items()):
        bound = 1.0 / float(fi) ** 0.5
        w = jax.random.uniform(keys[2 * i], (fi, fo), jnp.float32, -bound, bound)
        b = jax.random.uniform(keys[2 * i + 1], (1, fo), jnp.float32, -bound, bound)
        params[f"{name[0]}w{name[1]}"] = w
        params[f"{name[0]}b{name[1]}"] = b
    return params


def pack_params(params, inputs, outputs):
    """Pack all actor/critic weights into one zero-free bf16 slab [k1+400, 512]."""
    assert outputs + 1 <= OUT_W, "outputs must fit the 128-lane merged output"
    k1 = _round_up(inputs, ALIGN)
    rows = _slab_rows(k1)
    slab = jnp.zeros((rows, F), jnp.float32)

    # Layer 1: concat actor|critic along the output axis; rows inputs..k1 stay zero
    # (they multiply the zero-padded input columns).
    slab = slab.at[0:inputs, 0:H].set(params["aw1"])
    slab = slab.at[0:inputs, H:F].set(params["cw1"])

    # Layer 2: actor / critic blocks side-by-side (no zero block shipped).
    off = k1
    slab = slab.at[off:off + H, 0:H].set(params["aw2"])
    slab = slab.at[off:off + H, H:F].set(params["cw2"])

    # Layer 3: fused [512, 128] (value -> col 0, probs -> cols 1..outputs),
    # stored as four [128, 128] K-chunks side-by-side in a single 128-row block.
    w3 = jnp.zeros((F, OUT_W), jnp.float32)
    w3 = w3.at[0:H, 1:1 + outputs].set(params["aw3"])
    w3 = w3.at[H:F, 0:1].set(params["cw3"])
    off = k1 + H
    for j in range(4):
        slab = slab.at[off:off + OUT_W, OUT_W * j:OUT_W * (j + 1)].set(
            w3[OUT_W * j:OUT_W * (j + 1), :])

    # Bias block (one 16-row tail slot): row0=b1, row1=b2, row2=b3 (cols 0:128).
    off = k1 + H + OUT_W
    b1 = jnp.concatenate([params["ab1"], params["cb1"]], axis=1)        # [1, 512]
    b2 = jnp.concatenate([params["ab2"], params["cb2"]], axis=1)        # [1, 512]
    slab = slab.at[off:off + 1, :].set(b1)
    slab = slab.at[off + 1:off + 2, :].set(b2)
    slab = slab.at[off + 2, 0].set(params["cb3"][0, 0])
    slab = slab.at[off + 2, 1:1 + outputs].set(params["ab3"][0])

    return slab.astype(jnp.bfloat16)


def _reference_forward(x, params):
    """Pure-JAX reference (un-fused), full-precision matmuls."""
    hp = jax.lax.Precision.HIGHEST

    def lin(h, w, b):
        return jnp.dot(h, w, precision=hp) + b

    p = jax.nn.relu(lin(x, params["aw1"], params["ab1"]))
    p = jax.nn.relu(lin(p, params["aw2"], params["ab2"]))
    p = lin(p, params["aw3"], params["ab3"])
    v = jax.nn.relu(lin(x, params["cw1"], params["cb1"]))
    v = jax.nn.relu(lin(v, params["cw2"], params["cb2"]))
    v = lin(v, params["cw3"], params["cb3"])
    return v, p


if __name__ == "__main__":
    INPUTS = 32     # state feature dim
    OUTPUTS = 8     # action dim
    BATCH = 8

    params = init_params(INPUTS, OUTPUTS, jax.random.PRNGKey(0))
    slab = pack_params(params, INPUTS, OUTPUTS)

    x = jax.random.normal(jax.random.PRNGKey(0), (BATCH, INPUTS), jnp.float32)

    value, probs = ann_v2_forward(x, slab, outputs=OUTPUTS)
    jax.block_until_ready((value, probs))

    v_exp, p_exp = _reference_forward(x, params)
    assert value.shape == (BATCH, 1)
    assert probs.shape == (BATCH, OUTPUTS)
    # bf16 weights / bf16 MXU inputs with f32 accumulation -> ~1e-2 relative error budget.
    assert jnp.allclose(value, v_exp, atol=3e-2, rtol=3e-2), \
        float(jnp.max(jnp.abs(value - v_exp)))
    assert jnp.allclose(probs, p_exp, atol=3e-2, rtol=3e-2), \
        float(jnp.max(jnp.abs(probs - p_exp)))

    print("KERNEL_OK")
</pallas_src>

<mosaic_0001>
module attributes {stable_mosaic.version = 11 : i64} {
  func.func @_ann_v2_kernel(%arg0: i32, %arg1: memref<8x32xf32, #tpu.memory_space<vmem>>, %arg2: memref<432x512xbf16, #tpu.memory_space<vmem>>, %arg3: memref<8x128xf32, #tpu.memory_space<vmem>>) attributes {dimension_semantics = [#tpu.dimension_semantics<parallel>], iteration_bounds = array<i64: 1>, scalar_prefetch = 0 : i64, scratch_operands = 0 : i64, tpu.core_type = #tpu.core_type<tc>, window_params = [{transform_indices = @transform_0, window_bounds = array<i64: 8, 32>}, {pipeline_mode = #tpu.pipeline_mode<synchronous>, transform_indices = @transform_1, window_bounds = array<i64: 432, 512>}, {transform_indices = @transform_2, window_bounds = array<i64: 8, 128>}]} {
    %c0 = arith.constant 0 : index
    %c0_0 = arith.constant 0 : index
    %0 = vector.load %arg1[%c0, %c0_0] : memref<8x32xf32, #tpu.memory_space<vmem>>, vector<8x32xf32>
    %1 = arith.truncf %0 : vector<8x32xf32> to vector<8x32xbf16>
    %c416 = arith.constant 416 : index
    %c0_1 = arith.constant 0 : index
    %2 = vector.load %arg2[%c416, %c0_1] : memref<432x512xbf16, #tpu.memory_space<vmem>>, vector<1x512xbf16>
    %3 = arith.extf %2 : vector<1x512xbf16> to vector<1x512xf32>
    %c417 = arith.constant 417 : index
    %c0_2 = arith.constant 0 : index
    %4 = vector.load %arg2[%c417, %c0_2] : memref<432x512xbf16, #tpu.memory_space<vmem>>, vector<1x512xbf16>
    %5 = arith.extf %4 : vector<1x512xbf16> to vector<1x512xf32>
    %c418 = arith.constant 418 : index
    %c0_3 = arith.constant 0 : index
    %6 = vector.load %arg2[%c418, %c0_3] : memref<432x512xbf16, #tpu.memory_space<vmem>>, vector<1x128xbf16>
    %7 = arith.extf %6 : vector<1x128xbf16> to vector<1x128xf32>
    %c0_4 = arith.constant 0 : index
    %c0_5 = arith.constant 0 : index
    %8 = vector.load %arg2[%c0_4, %c0_5] : memref<432x512xbf16, #tpu.memory_space<vmem>>, vector<32x512xbf16>
    %cst = arith.constant dense<0.000000e+00> : vector<8x512xf32>
    %9 = tpu.matmul %1, %8, %cst {dimension_numbers = #tpu.dot_dimension_numbers<[1], [0], [0], [1], [0, 0, 1, 1], [], []>} : vector<8x32xbf16>, vector<32x512xbf16>, vector<8x512xf32> -> vector<8x512xf32>
    %10 = vector.broadcast %3 : vector<1x512xf32> to vector<8x512xf32>
    %11 = arith.addf %9, %10 : vector<8x512xf32>
    %cst_6 = arith.constant 0.000000e+00 : f32
    %12 = vector.broadcast %cst_6 : f32 to vector<8x512xf32>
    %13 = arith.maximumf %11, %12 : vector<8x512xf32>
    %14 = arith.truncf %13 : vector<8x512xf32> to vector<8x512xbf16>
    %15 = vector.extract_strided_slice %14 {offsets = [0, 0], sizes = [8, 256], strides = [1, 1]} : vector<8x512xbf16> to vector<8x256xbf16>
    %c32 = arith.constant 32 : index
    %c0_7 = arith.constant 0 : index
    %16 = vector.load %arg2[%c32, %c0_7] : memref<432x512xbf16, #tpu.memory_space<vmem>>, vector<256x256xbf16>
    %cst_8 = arith.constant dense<0.000000e+00> : vector<8x256xf32>
    %17 = tpu.matmul %15, %16, %cst_8 {dimension_numbers = #tpu.dot_dimension_numbers<[1], [0], [0], [1], [0, 0, 1, 1], [], []>} : vector<8x256xbf16>, vector<256x256xbf16>, vector<8x256xf32> -> vector<8x256xf32>
    %18 = vector.extract_strided_slice %5 {offsets = [0, 0], sizes = [1, 256], strides = [1, 1]} : vector<1x512xf32> to vector<1x256xf32>
    %19 = vector.broadcast %18 : vector<1x256xf32> to vector<8x256xf32>
    %20 = arith.addf %17, %19 : vector<8x256xf32>
    %21 = vector.extract_strided_slice %14 {offsets = [0, 256], sizes = [8, 256], strides = [1, 1]} : vector<8x512xbf16> to vector<8x256xbf16>
    %c32_9 = arith.constant 32 : index
    %c256 = arith.constant 256 : index
    %22 = vector.load %arg2[%c32_9, %c256] : memref<432x512xbf16, #tpu.memory_space<vmem>>, vector<256x256xbf16>
    %cst_10 = arith.constant dense<0.000000e+00> : vector<8x256xf32>
    %23 = tpu.matmul %21, %22, %cst_10 {dimension_numbers = #tpu.dot_dimension_numbers<[1], [0], [0], [1], [0, 0, 1, 1], [], []>} : vector<8x256xbf16>, vector<256x256xbf16>, vector<8x256xf32> -> vector<8x256xf32>
    %24 = vector.extract_strided_slice %5 {offsets = [0, 256], sizes = [1, 256], strides = [1, 1]} : vector<1x512xf32> to vector<1x256xf32>
    %25 = vector.broadcast %24 : vector<1x256xf32> to vector<8x256xf32>
    %26 = arith.addf %23, %25 : vector<8x256xf32>
    %cst_11 = arith.constant 0.000000e+00 : f32
    %27 = vector.broadcast %cst_11 : f32 to vector<8x256xf32>
    %28 = arith.maximumf %20, %27 : vector<8x256xf32>
    %29 = arith.truncf %28 : vector<8x256xf32> to vector<8x256xbf16>
    %cst_12 = arith.constant 0.000000e+00 : f32
    %30 = vector.broadcast %cst_12 : f32 to vector<8x256xf32>
    %31 = arith.maximumf %26, %30 : vector<8x256xf32>
    %32 = arith.truncf %31 : vector<8x256xf32> to vector<8x256xbf16>
    %33 = vector.extract_strided_slice %29 {offsets = [0, 0], sizes = [8, 128], strides = [1, 1]} : vector<8x256xbf16> to vector<8x128xbf16>
    %c288 = arith.constant 288 : index
    %c0_13 = arith.constant 0 : index
    %34 = vector.load %arg2[%c288, %c0_13] : memref<432x512xbf16, #tpu.memory_space<vmem>>, vector<128x128xbf16>
    %cst_14 = arith.constant dense<0.000000e+00> : vector<8x128xf32>
    %35 = tpu.matmul %33, %34, %cst_14 {dimension_numbers = #tpu.dot_dimension_numbers<[1], [0], [0], [1], [0, 0, 1, 1], [], []>} : vector<8x128xbf16>, vector<128x128xbf16>, vector<8x128xf32> -> vector<8x128xf32>
    %36 = vector.extract_strided_slice %29 {offsets = [0, 128], sizes = [8, 128], strides = [1, 1]} : vector<8x256xbf16> to vector<8x128xbf16>
    %c288_15 = arith.constant 288 : index
    %c128 = arith.constant 128 : index
    %37 = vector.load %arg2[%c288_15, %c128] : memref<432x512xbf16, #tpu.memory_space<vmem>>, vector<128x128xbf16>
    %cst_16 = arith.constant dense<0.000000e+00> : vector<8x128xf32>
    %38 = tpu.matmul %36, %37, %cst_16 {dimension_numbers = #tpu.dot_dimension_numbers<[1], [0], [0], [1], [0, 0, 1, 1], [], []>} : vector<8x128xbf16>, vector<128x128xbf16>, vector<8x128xf32> -> vector<8x128xf32>
    %39 = arith.addf %35, %38 : vector<8x128xf32>
    %40 = vector.extract_strided_slice %32 {offsets = [0, 0], sizes = [8, 128], strides = [1, 1]} : vector<8x256xbf16> to vector<8x128xbf16>
    %c288_17 = arith.constant 288 : index
    %c256_18 = arith.constant 256 : index
    %41 = vector.load %arg2[%c288_17, %c256_18] : memref<432x512xbf16, #tpu.memory_space<vmem>>, vector<128x128xbf16>
    %cst_19 = arith.constant dense<0.000000e+00> : vector<8x128xf32>
    %42 = tpu.matmul %40, %41, %cst_19 {dimension_numbers = #tpu.dot_dimension_numbers<[1], [0], [0], [1], [0, 0, 1, 1], [], []>} : vector<8x128xbf16>, vector<128x128xbf16>, vector<8x128xf32> -> vector<8x128xf32>
    %43 = arith.addf %39, %42 : vector<8x128xf32>
    %44 = vector.extract_strided_slice %32 {offsets = [0, 128], sizes = [8, 128], strides = [1, 1]} : vector<8x256xbf16> to vector<8x128xbf16>
    %c288_20 = arith.constant 288 : index
    %c384 = arith.constant 384 : index
    %45 = vector.load %arg2[%c288_20, %c384] : memref<432x512xbf16, #tpu.memory_space<vmem>>, vector<128x128xbf16>
    %cst_21 = arith.constant dense<0.000000e+00> : vector<8x128xf32>
    %46 = tpu.matmul %44, %45, %cst_21 {dimension_numbers = #tpu.dot_dimension_numbers<[1], [0], [0], [1], [0, 0, 1, 1], [], []>} : vector<8x128xbf16>, vector<128x128xbf16>, vector<8x128xf32> -> vector<8x128xf32>
    %47 = arith.addf %43, %46 : vector<8x128xf32>
    %48 = vector.broadcast %7 : vector<1x128xf32> to vector<8x128xf32>
    %49 = arith.addf %47, %48 : vector<8x128xf32>
    %c0_22 = arith.constant 0 : index
    %c0_23 = arith.constant 0 : index
    %50 = vector.load %arg3[%c0_22, %c0_23] : memref<8x128xf32, #tpu.memory_space<vmem>>, vector<8x128xf32>
    tpu.vector_store %arg3[%c0_22, %c0_23], %49 {strides = array<i32>} : memref<8x128xf32, #tpu.memory_space<vmem>>, vector<8x128xf32>,
    return
  }
  func.func @transform_0(%arg0: i32) -> (i32, i32) {
    %c0_i32 = arith.constant 0 : i32
    %c0_i32_0 = arith.constant 0 : i32
    return %arg0, %c0_i32 : i32, i32
  }
  func.func @transform_1(%arg0: i32) -> (i32, i32) {
    %c0_i32 = arith.constant 0 : i32
    %c0_i32_0 = arith.constant 0 : i32
    %c0_i32_1 = arith.constant 0 : i32
    return %c0_i32, %c0_i32_0 : i32, i32
  }
  func.func @transform_2(%arg0: i32) -> (i32, i32) {
    %c0_i32 = arith.constant 0 : i32
    %c0_i32_0 = arith.constant 0 : i32
    return %arg0, %c0_i32 : i32, i32
  }
}

</mosaic_0001>

<bundles_post_ra>
// kernel: ann_v2_forward.1
= control target key start
LH: loop header
LB: loop body
LE: loop exit
PB: predicated region body
PF: predicated region fallthrough
CT: control target
= control target key end

     0   :  { %7 = vsyncpa [#allocation3], 0  ;;  %s1668_s0 = inlined_call_operand.hbm [shape: f32[8,32], index: 0, kind: input, shape index: {}]   ;;  %s1669_s1 = inlined_call_operand.hbm [shape: bf16[432,512], index: 1, kind: input, shape index: {}]   ;;  %s1670_s2 = inlined_call_operand.vmem [shape: f32[8,128], index: 2, kind: output, shape index: {}]  }
   0x1   :  { %8 = vsyncpa [#allocation5], 0  ;;  %s1543_s9 = smov [#allocation2]   ;;  %s1544_s11 = smov [#allocation4]  }
   0x2   :  { %s15_s10 = sshll.u32 %s1543_s9, 4  ;;  %s24_s12 = sshll.u32 %s1544_s11, 4  ;;  %s16_s10 = int_to_ptr.vmem [resolvable:$true] %s15_s10  ;;  %s1565_s12 = int_to_ptr.vmem [resolvable:$true] %s24_s12 }
   0x3   :  { %s1495_s15 = scalar_lea.hbm %s1668_s0, 128 }
   0x4   :  { %p1496_p0 = scmp.ne.s32.totalorder %s1668_s0, %s1495_s15  ;;  %p1499_p1 = scmp.lt.u32.totalorder %s1495_s15, %s1668_s0 }
   0x6   :  { %p1501_p2 = pnand %p1499_p1, %p1496_p0 }
   0x8   :  { %1504 = shalt.err (!%p1501_p2)
}
   0x9   :  { %s1505_s20 = scalar_lea.vmem %s16_s10, 128  ;;  %p1510_p4 = scmp.lt.s32.totalorder %s16_s10, %s16_s10 }
   0xa   :  { %p1506_p3 = scmp.ne.s32.totalorder %s16_s10, %s1505_s20  ;;  %p1511_p5 = scmp.lt.s32.totalorder %s1505_s20, %s1505_s20 }
   0xc   :  { %p1512_p6 = por %p1511_p5, %p1510_p4 }
   0xe   :  { %p1513_p7 = pnand %p1512_p6, %p1506_p3 }
  0x10   :  { %1516 = shalt.err (!%p1513_p7)
}
  0x11   :  { %18 = dma.hbm_to_vmem [thread:$0]  %s1668_s0, 128, %s16_s10, [#allocation3]  }
  0x12   :  { %s1517_s25 = scalar_lea.hbm %s1669_s1, 13824 }
  0x13   :  { %p1518_p8 = scmp.ne.s32.totalorder %s1669_s1, %s1517_s25  ;;  %p1521_p9 = scmp.lt.u32.totalorder %s1517_s25, %s1669_s1 }
  0x15   :  { %p1523_p10 = pnand %p1521_p9, %p1518_p8 }
  0x17   :  { %1526 = shalt.err (!%p1523_p10)
}
  0x18   :  { %s1527_s30 = scalar_lea.vmem %s1565_s12, 13824  ;;  %p1532_p12 = scmp.lt.s32.totalorder %s1565_s12, %s1565_s12 }
  0x19   :  { %p1528_p11 = scmp.ne.s32.totalorder %s1565_s12, %s1527_s30  ;;  %p1533_p13 = scmp.lt.s32.totalorder %s1527_s30, %s1527_s30 }
  0x1b   :  { %p1534_p0 = por %p1533_p13, %p1532_p12 }
  0x1d   :  { %p1535_p1 = pnand %p1534_p0, %p1528_p11 }
  0x1f   :  { %1538 = shalt.err (!%p1535_p1)
}
  0x20   :  { %s1545_s0 = smov 256   ;;  %s1546_s3 = smov 16  }
  0x21   :  { %30 = dma.hbm_to_vmem [thread:$0]  %s1669_s1, 13824, %s1565_s12, [#allocation5], %s1545_s0, %s1545_s0, %s1546_s3  }
  0x22   :  { %1539 = dma.done.wait [#allocation3], 128  }
  0x23   :  { %1540 = vsyncadd [#allocation3], 4294967168 }
  0x24   :  { %1541 = dma.done.wait [#allocation5], 13824  }
  0x25   :  { %1542 = vsyncadd [#allocation5], 4294953472  ;;  %v1547_v0 = vmov 0   ;;  %v1355_v1 = vld [vmem:[#allocation4 + $0x4] ss:$16 sps:$4 sm:$0xff]   ;;  %v38_v5 = vld [vmem:[#allocation2] sm:$0xff] }
  0x26   :  { %148 = vmatprep.mubr.bf16.mxu0 %v1547_v0  ;;  %189 = vmatprep.mubr.bf16.mxu1 %v1547_v0  ;;  %v1357_v2 = vld [vmem:[#allocation4] ss:$16 sps:$4 sm:$0xff]   ;;  %v1358_v3 = vld [vmem:[#allocation4 + $0x24] ss:$16 sps:$4 sm:$0xff]   ;;  %v1361_v6 = vld [vmem:[#allocation4 + $0xc] ss:$16 sps:$4 sm:$0xff]   ;;  %v39_v9 = vpack.c.bf16 %v38_v5, %v38_v5 }
  0x27   :  { %116 = vmatprep.subr.bf16.mxu0 %v1355_v1  ;;  %v1360_v4 = vld [vmem:[#allocation4 + $0x20] ss:$16 sps:$4 sm:$0xff]   ;;  %v1363_v7 = vld [vmem:[#allocation4 + $0x8] ss:$16 sps:$4 sm:$0xff]   ;;  %157 = vmatprep.subr.bf16.mxu1 %v1361_v6  ;;  %v1364_v8 = vld [vmem:[#allocation4 + $0x2c] ss:$16 sps:$4 sm:$0xff]  }
  0x28   :  { %117 = vmatpush1.bf16.msra.mxu0 %v1357_v2  ;;  %158 = vmatpush1.bf16.msra.mxu1 %v1363_v7  ;;  %v1366_v10 = vld [vmem:[#allocation4 + $0x28] ss:$16 sps:$4 sm:$0xff]   ;;  %v1369_v11 = vld [vmem:[#allocation4 + $0x44] ss:$16 sps:$4 sm:$0xff]   ;;  %vm112_vm0 = vcmask 261120   ;;  %vm1549_vm1 = vmmov 0  }
  0x29   :  { %118 = vmatprep.subr.bf16.mxu0 %v1358_v3  ;;  %159 = vmatprep.subr.bf16.mxu1 %v1364_v8  ;;  %v1367_v12 = vld [vmem:[#allocation4 + $0x40] ss:$16 sps:$4 sm:$0xff]   ;;  %v1372_v13 = vld [vmem:[#allocation4 + $0x64] ss:$16 sps:$4 sm:$0xff]   ;;  %v1388_v18 = vld [vmem:[#allocation4 + $0x48] ss:$16 sps:$4 sm:$0xff]  }
  0x2a   :  { %v1370_v14 = vld [vmem:[#allocation4 + $0x60] ss:$16 sps:$4 sm:$0xff]   ;;  %v1375_v15 = vld [vmem:[#allocation4 + $0x84] ss:$16 sps:$4 sm:$0xff]   ;;  %v1390_v19 = vld [vmem:[#allocation4 + $0x4c] ss:$16 sps:$4 sm:$0xff]  }
  0x2b   :  { %v1373_v16 = vld [vmem:[#allocation4 + $0x80] ss:$16 sps:$4 sm:$0xff]   ;;  %v1378_v17 = vld [vmem:[#allocation4 + $0xa4] ss:$16 sps:$4 sm:$0xff]   ;;  %v1396_v21 = vld [vmem:[#allocation4 + $0x6c] ss:$16 sps:$4 sm:$0xff]  }
  0x2c   :  { %119 = vmatpush1.bf16.msra.mxu0 %v1360_v4  ;;  %160 = vmatpush1.bf16.msra.mxu1 %v1366_v10  ;;  %v1376_v20 = vld [vmem:[#allocation4 + $0xa0] ss:$16 sps:$4 sm:$0xff]   ;;  %v1394_v22 = vld [vmem:[#allocation4 + $0x68] ss:$16 sps:$4 sm:$0xff]   ;;  %v1381_v23 = vld [vmem:[#allocation4 + $0xc4] ss:$16 sps:$4 sm:$0xff]  }
  0x2d   :  { %406 = vmatprep.subr.bf16.mxu0 %v1369_v11  ;;  %647 = vmatprep.subr.bf16.mxu1 %v1390_v19  ;;  %v1402_v24 = vld [vmem:[#allocation4 + $0x8c] ss:$16 sps:$4 sm:$0xff]   ;;  %v1379_v25 = vld [vmem:[#allocation4 + $0xc0] ss:$16 sps:$4 sm:$0xff]   ;;  %v1384_v26 = vld [vmem:[#allocation4 + $0xe4] ss:$16 sps:$4 sm:$0xff]  }
  0x2e   :  { %v1400_v27 = vld [vmem:[#allocation4 + $0x88] ss:$16 sps:$4 sm:$0xff]   ;;  %v1408_v28 = vld [vmem:[#allocation4 + $0xac] ss:$16 sps:$4 sm:$0xff]   ;;  %v1382_v29 = vld [vmem:[#allocation4 + $0xe0] ss:$16 sps:$4 sm:$0xff]  }
  0x2f   :  { %1134 = vmatmul.mubr.msk.bf16.vlgmr.msra.gmra.mrb[0].mxu0 %vm112_vm0, %v39_v9  ;;  %1135 = vmatmul.mubr.msk.bf16.vlgmr.msra.gmra.mrb[0].mxu1 %vm112_vm0, %v39_v9  ;;  %v1387_v30 = vld [vmem:[#allocation4 + $0x104] ss:$16 sps:$4 sm:$0xff]   ;;  %v1406_v31 = vld [vmem:[#allocation4 + $0xa8] ss:$16 sps:$4 sm:$0xff]   ;;  %v1414_v32 = vld [vmem:[#allocation4 + $0xcc] ss:$16 sps:$4 sm:$0xff]  }
  0x30   :  { %407 = vmatpush1.bf16.msra.mxu0 %v1367_v12  ;;  %648 = vmatpush1.bf16.msra.mxu1 %v1388_v18  ;;  %v1385_v33 = vld [vmem:[#allocation4 + $0x100] ss:$16 sps:$4 sm:$0xff]   ;;  %v1393_v34 = vld [vmem:[#allocation4 + $0x124] ss:$16 sps:$4 sm:$0xff]   ;;  %v1412_v35 = vld [vmem:[#allocation4 + $0xc8] ss:$16 sps:$4 sm:$0xff]   ;;  %v56_v12 = vlaneseq }
  0x31   :  { %408 = vmatprep.subr.bf16.mxu0 %v1372_v13  ;;  %649 = vmatprep.subr.bf16.mxu1 %v1396_v21  ;;  %v1420_v36 = vld [vmem:[#allocation4 + $0xec] ss:$16 sps:$4 sm:$0xff]   ;;  %v1391_v37 = vld [vmem:[#allocation4 + $0x120] ss:$16 sps:$4 sm:$0xff]   ;;  %v1418_v38 = vld [vmem:[#allocation4 + $0xe8] ss:$16 sps:$4 sm:$0xff]  }
  0x32   :  { %v1399_v39 = vld [vmem:[#allocation4 + $0x144] ss:$16 sps:$4 sm:$0xff]   ;;  %v1426_v40 = vld [vmem:[#allocation4 + $0x10c] ss:$16 sps:$4 sm:$0xff]   ;;  %v1397_v41 = vld [vmem:[#allocation4 + $0x140] ss:$16 sps:$4 sm:$0xff]  }
  0x33   :  { %v1424_v42 = vld [vmem:[#allocation4 + $0x108] ss:$16 sps:$4 sm:$0xff]   ;;  %v1405_v43 = vld [vmem:[#allocation4 + $0x164] ss:$16 sps:$4 sm:$0xff]   ;;  %v1403_v44 = vld [vmem:[#allocation4 + $0x160] ss:$16 sps:$4 sm:$0xff]  }
  0x34   :  { %409 = vmatpush1.bf16.msra.mxu0 %v1370_v14  ;;  %650 = vmatpush1.bf16.msra.mxu1 %v1394_v22  ;;  %v1411_v45 = vld [vmem:[#allocation4 + $0x184] ss:$16 sps:$4 sm:$0xff]   ;;  %v1409_v46 = vld [vmem:[#allocation4 + $0x180] ss:$16 sps:$4 sm:$0xff]   ;;  %v1432_v53 = vld [vmem:[#allocation4 + $0x12c] ss:$16 sps:$4 sm:$0xff]  }
  0x35   :  { %410 = vmatprep.subr.bf16.mxu0 %v1375_v15  ;;  %651 = vmatprep.subr.bf16.mxu1 %v1402_v24  ;;  %v1417_v47 = vld [vmem:[#allocation4 + $0x1a4] ss:$16 sps:$4 sm:$0xff]   ;;  %v1415_v48 = vld [vmem:[#allocation4 + $0x1a0] ss:$16 sps:$4 sm:$0xff]   ;;  %v1430_v54 = vld [vmem:[#allocation4 + $0x128] ss:$16 sps:$4 sm:$0xff]  }
  0x36   :  { %v1423_v49 = vld [vmem:[#allocation4 + $0x1c4] ss:$16 sps:$4 sm:$0xff]   ;;  %v1421_v50 = vld [vmem:[#allocation4 + $0x1c0] ss:$16 sps:$4 sm:$0xff]   ;;  %v1438_v57 = vld [vmem:[#allocation4 + $0x14c] ss:$16 sps:$4 sm:$0xff]  }
  0x37   :  { %v1429_v51 = vld [vmem:[#allocation4 + $0x1e4] ss:$16 sps:$4 sm:$0xff]   ;;  %v1427_v52 = vld [vmem:[#allocation4 + $0x1e0] ss:$16 sps:$4 sm:$0xff]   ;;  %v1436_v58 = vld [vmem:[#allocation4 + $0x148] ss:$16 sps:$4 sm:$0xff]  }
  0x38   :  { %411 = vmatpush1.bf16.msra.mxu0 %v1373_v16  ;;  %652 = vmatpush1.bf16.msra.mxu1 %v1400_v27  ;;  %v1435_v55 = vld [vmem:[#allocation4 + $0x204] ss:$16 sps:$4 sm:$0xff]   ;;  %v1433_v56 = vld [vmem:[#allocation4 + $0x200] ss:$16 sps:$4 sm:$0xff]   ;;  %v1444_v61 = vld [vmem:[#allocation4 + $0x16c] ss:$16 sps:$4 sm:$0xff]  }
  0x39   :  { %412 = vmatprep.subr.bf16.mxu0 %v1378_v17  ;;  %653 = vmatprep.subr.bf16.mxu1 %v1408_v28  ;;  %v1441_v59 = vld [vmem:[#allocation4 + $0x224] ss:$16 sps:$4 sm:$0xff]   ;;  %v1439_v60 = vld [vmem:[#allocation4 + $0x220] ss:$16 sps:$4 sm:$0xff]   ;;  %v1442_v62 = vld [vmem:[#allocation4 + $0x168] ss:$16 sps:$4 sm:$0xff]  }
  0x3a   :  { %v1445_v63 = vld [vmem:[#allocation4 + $0x188] ss:$16 sps:$4 sm:$0xff]   ;;  %v1447_v0 = vld [vmem:[#allocation4 + $0x18c] ss:$16 sps:$4 sm:$0xff]   ;;  %v1548_v4 = vmov 0.0   ;;  %v1598_v13 = vshrl.u32 %v56_v12, 7 }
  0x3b   :  { %v1450_v1 = vld [vmem:[#allocation4 + $0x1ac] ss:$16 sps:$4 sm:$0xff]   ;;  %v1448_v2 = vld [vmem:[#allocation4 + $0x1a8] ss:$16 sps:$4 sm:$0xff]   ;;  %v1600_v14 = vld [vmem:[#allocation4 + $0x340] sm:$0x11] }
  0x3c   :  { %413 = vmatpush1.bf16.msra.mxu0 %v1376_v20  ;;  %654 = vmatpush1.bf16.msra.mxu1 %v1406_v31  ;;  %v1453_v3 = vld [vmem:[#allocation4 + $0x1cc] ss:$16 sps:$4 sm:$0xff]   ;;  %v1451_v5 = vld [vmem:[#allocation4 + $0x1c8] ss:$16 sps:$4 sm:$0xff]   ;;  %v42_v15 = vunpack.c.l.bf16 %v1600_v14  ;;  %v58_v16 = vsub.s32 0, %v1598_v13  ;;  %v43_v18 = vunpack.c.h.bf16 %v1600_v14 }
  0x3d   :  { %414 = vmatprep.subr.bf16.mxu0 %v1381_v23  ;;  %655 = vmatprep.subr.bf16.mxu1 %v1414_v32  ;;  %v1456_v6 = vld [vmem:[#allocation4 + $0x1ec] ss:$16 sps:$4 sm:$0xff]   ;;  %v1454_v7 = vld [vmem:[#allocation4 + $0x1e8] ss:$16 sps:$4 sm:$0xff]  }
  0x3e   :  { %v1459_v8 = vld [vmem:[#allocation4 + $0x20c] ss:$16 sps:$4 sm:$0xff]   ;;  %v1457_v9 = vld [vmem:[#allocation4 + $0x208] ss:$16 sps:$4 sm:$0xff]   ;;  %v59_v20 = vrot.slane %v42_v15, %v58_v16  ;;  %v63_v22 = vrot.slane %v43_v18, %v58_v16 }
  0x3f   :  { %v1462_v10 = vld [vmem:[#allocation4 + $0x22c] ss:$16 sps:$4 sm:$0xff]   ;;  %v1460_v11 = vld [vmem:[#allocation4 + $0x228] ss:$16 sps:$4 sm:$0xff]  }
  0x40   :  { %415 = vmatpush1.bf16.msra.mxu0 %v1379_v25  ;;  %656 = vmatpush1.bf16.msra.mxu1 %v1412_v35  ;;  %v1604_v17 = vld [vmem:[#allocation4 + $0x348] sm:$0x11] }
  0x41   :  { %416 = vmatprep.subr.bf16.mxu0 %v1384_v26  ;;  %657 = vmatprep.subr.bf16.mxu1 %v1420_v36  ;;  %v44_v19 = vunpack.c.l.bf16 %v1604_v17  ;;  %v45_v21 = vunpack.c.h.bf16 %v1604_v17  ;;  %v1481_v14 = vld [vmem:[#allocation4 + $0x26c] ss:$16 sps:$4 sm:$0xff]   ;;  %v1494_v17 = vld [vmem:[#allocation4 + $0x328] ss:$16 sps:$4 sm:$0xff]  }
  0x43   :  { %v67_v24 = vrot.slane %v44_v19, %v58_v16  ;;  %v71_v27 = vrot.slane %v45_v21, %v58_v16  ;;  %v1480_v16 = vld [vmem:[#allocation4 + $0x248] ss:$16 sps:$4 sm:$0xff]  }
  0x44   :  { %417 = vmatpush1.bf16.msra.mxu0 %v1382_v29  ;;  %658 = vmatpush1.bf16.msra.mxu1 %v1418_v38 }
  0x45   :  { %418 = vmatprep.subr.bf16.mxu0 %v1387_v30  ;;  %659 = vmatprep.subr.bf16.mxu1 %v1426_v40 }
  0x48   :  { %419 = vmatpush1.bf16.msra.mxu0 %v1385_v33  ;;  %660 = vmatpush1.bf16.msra.mxu1 %v1424_v42 }
  0x49   :  { %420 = vmatprep.subr.bf16.mxu0 %v1393_v34  ;;  %661 = vmatprep.subr.bf16.mxu1 %v1432_v53  ;;  %v1472_v53 = vld [vmem:[#allocation4 + $0x2c4] ss:$16 sps:$4 sm:$0xff]  }
  0x4c   :  { %421 = vmatpush1.bf16.msra.mxu0 %v1391_v37  ;;  %662 = vmatpush1.bf16.msra.mxu1 %v1430_v54  ;;  %v1471_v54 = vld [vmem:[#allocation4 + $0x2c0] ss:$16 sps:$4 sm:$0xff]  }
  0x4d   :  { %422 = vmatprep.subr.bf16.mxu0 %v1399_v39  ;;  %663 = vmatprep.subr.bf16.mxu1 %v1438_v57  ;;  %v1475_v57 = vld [vmem:[#allocation4 + $0x300] ss:$16 sps:$4 sm:$0xff]  }
  0x50   :  { %423 = vmatpush1.bf16.msra.mxu0 %v1397_v41  ;;  %664 = vmatpush1.bf16.msra.mxu1 %v1436_v58  ;;  %v1464_v41 = vld [vmem:[#allocation4 + $0x244] ss:$16 sps:$4 sm:$0xff]  }
  0x51   :  { %424 = vmatprep.subr.bf16.mxu0 %v1405_v43  ;;  %665 = vmatprep.subr.bf16.mxu1 %v1444_v61  ;;  %v1476_v58 = vld [vmem:[#allocation4 + $0x304] ss:$16 sps:$4 sm:$0xff]   ;;  %v240_v61 = vsub.s32 1, %v1598_v13 }
  0x54   :  { %425 = vmatpush1.bf16.msra.mxu0 %v1403_v44  ;;  %666 = vmatpush1.bf16.msra.mxu1 %v1442_v62  ;;  %v241_v62 = vrot.slane %v42_v15, %v240_v61  ;;  %v1482_v15 = vld [vmem:[#allocation4 + $0x268] ss:$16 sps:$4 sm:$0xff]  }
  0x55   :  { %426 = vmatprep.subr.bf16.mxu0 %v1411_v45  ;;  %667 = vmatprep.subr.bf16.mxu1 %v1447_v0 }
  0x58   :  { %427 = vmatpush1.bf16.msra.mxu0 %v1409_v46  ;;  %668 = vmatpush1.bf16.msra.mxu1 %v1445_v63  ;;  %v1463_v46 = vld [vmem:[#allocation4 + $0x240] ss:$16 sps:$4 sm:$0xff]   ;;  %v245_v63 = vrot.slane %v43_v18, %v240_v61  ;;  %v1483_v18 = vld [vmem:[#allocation4 + $0x28c] ss:$16 sps:$4 sm:$0xff]  }
  0x59   :  { %428 = vmatprep.subr.bf16.mxu0 %v1417_v47  ;;  %669 = vmatprep.subr.bf16.mxu1 %v1450_v1  ;;  %v1466_v47 = vld [vmem:[#allocation4 + $0x264] ss:$16 sps:$4 sm:$0xff]  }
  0x5c   :  { %429 = vmatpush1.bf16.msra.mxu0 %v1415_v48  ;;  %670 = vmatpush1.bf16.msra.mxu1 %v1448_v2  ;;  %v1465_v48 = vld [vmem:[#allocation4 + $0x260] ss:$16 sps:$4 sm:$0xff]  }
  0x5d   :  { %430 = vmatprep.subr.bf16.mxu0 %v1423_v49  ;;  %671 = vmatprep.subr.bf16.mxu1 %v1453_v3  ;;  %v1468_v49 = vld [vmem:[#allocation4 + $0x284] ss:$16 sps:$4 sm:$0xff]  }
  0x60   :  { %431 = vmatpush1.bf16.msra.mxu0 %v1421_v50  ;;  %672 = vmatpush1.bf16.msra.mxu1 %v1451_v5  ;;  %v1467_v50 = vld [vmem:[#allocation4 + $0x280] ss:$16 sps:$4 sm:$0xff]  }
  0x61   :  { %432 = vmatprep.subr.bf16.mxu0 %v1429_v51  ;;  %673 = vmatprep.subr.bf16.mxu1 %v1456_v6  ;;  %v1470_v51 = vld [vmem:[#allocation4 + $0x2a4] ss:$16 sps:$4 sm:$0xff]  }
  0x64   :  { %433 = vmatpush1.bf16.msra.mxu0 %v1427_v52  ;;  %674 = vmatpush1.bf16.msra.mxu1 %v1454_v7  ;;  %v1469_v52 = vld [vmem:[#allocation4 + $0x2a0] ss:$16 sps:$4 sm:$0xff]  }
  0x65   :  { %434 = vmatprep.subr.bf16.mxu0 %v1435_v55  ;;  %675 = vmatprep.subr.bf16.mxu1 %v1459_v8  ;;  %v1474_v55 = vld [vmem:[#allocation4 + $0x2e4] ss:$16 sps:$4 sm:$0xff]  }
  0x68   :  { %435 = vmatpush1.bf16.msra.mxu0 %v1433_v56  ;;  %676 = vmatpush1.bf16.msra.mxu1 %v1457_v9  ;;  %v1473_v56 = vld [vmem:[#allocation4 + $0x2e0] ss:$16 sps:$4 sm:$0xff]  }
  0x69   :  { %436 = vmatprep.subr.bf16.mxu0 %v1441_v59  ;;  %677 = vmatprep.subr.bf16.mxu1 %v1462_v10  ;;  %v1477_v59 = vld [vmem:[#allocation4 + $0x320] ss:$16 sps:$4 sm:$0xff]   ;;  %v1479_v10 = vld [vmem:[#allocation4 + $0x24c] ss:$16 sps:$4 sm:$0xff]  }
  0x6c   :  { %437 = vmatpush1.bf16.msra.mxu0 %v1439_v60  ;;  %678 = vmatpush1.bf16.msra.mxu1 %v1460_v11  ;;  %v1478_v60 = vld [vmem:[#allocation4 + $0x324] ss:$16 sps:$4 sm:$0xff]  }
  0x6d   :  { %1268 = vmatprep.subr.bf16.mxu0 %v1548_v4  ;;  %1288 = vmatprep.subr.bf16.mxu1 %v1548_v4 }
 0x102   :  { %v150_v23 = vpop.f32.mrb[0].mxu0  ;;  %v191_v32 = vpop.f32.mrb[0].mxu1 }
 0x103   :  { %v151_v25 = vadd.f32 %v150_v23, %v59_v20  ;;  %v152_v26 = vpop.f32.mrb[1].mxu0  ;;  %v192_v34 = vadd.f32 %v191_v32, %v67_v24  ;;  %v193_v35 = vpop.f32.mrb[1].mxu1  ;;  %v1484_v24 = vld [vmem:[#allocation4 + $0x288] ss:$16 sps:$4 sm:$0xff]   ;;  %v482_v32 = vrot.slane %v44_v19, %v240_v61 }
 0x104   :  { %v153_v28 = vadd.f32 %v152_v26, %v63_v22  ;;  %v154_v29 = vpop.f32.mrb[2].mxu0  ;;  %v194_v36 = vadd.f32 %v193_v35, %v71_v27  ;;  %v195_v37 = vpop.f32.mrb[2].mxu1  ;;  %v1486_v26 = vld [vmem:[#allocation4 + $0x2a8] ss:$16 sps:$4 sm:$0xff]   ;;  %v1487_v27 = vld [vmem:[#allocation4 + $0x2cc] ss:$16 sps:$4 sm:$0xff]  }
 0x105   :  { %v198_v30 = vmax.f32 %v151_v25, 0.0  ;;  %v155_v31 = vpop.f32.mrb[3].mxu0  ;;  %v200_v39 = vmax.f32 %v192_v34, 0.0  ;;  %v196_v40 = vpop.f32.mrb[3].mxu1  ;;  %v1485_v25 = vld [vmem:[#allocation4 + $0x2ac] ss:$16 sps:$4 sm:$0xff]   ;;  %v486_v29 = vrot.slane %v45_v21, %v240_v61 }
 0x106   :  { %v199_v33 = vmax.f32 %v153_v28, 0.0  ;;  %v201_v43 = vmax.f32 %v194_v36, 0.0  ;;  %v1488_v28 = vld [vmem:[#allocation4 + $0x2c8] ss:$16 sps:$4 sm:$0xff]   ;;  %v1491_v34 = vld [vmem:[#allocation4 + $0x30c] ss:$16 sps:$4 sm:$0xff]  }
 0x107   :  { %v202_v42 = vpack.c.bf16 %v198_v30, %v198_v30  ;;  %v204_v44 = vpack.c.bf16 %v200_v39, %v200_v39  ;;  %v1489_v30 = vld [vmem:[#allocation4 + $0x2ec] ss:$16 sps:$4 sm:$0xff]   ;;  %v1490_v31 = vld [vmem:[#allocation4 + $0x2e8] ss:$16 sps:$4 sm:$0xff]  }
 0x108   :  { %v203_v38 = vpack.c.bf16 %v199_v33, %v199_v33  ;;  %v205_v45 = vpack.c.bf16 %v201_v43, %v201_v43  ;;  %v1492_v35 = vld [vmem:[#allocation4 + $0x308] ss:$16 sps:$4 sm:$0xff]   ;;  %v1493_v37 = vld [vmem:[#allocation4 + $0x32c] ss:$16 sps:$4 sm:$0xff]  }
 0x10a   :  { %438 = vmatprep.mubr.bf16.mxu0 %v203_v38  ;;  %679 = vmatprep.mubr.bf16.mxu1 %v205_v45 }
 0x10b   :  { %439 = vmatmul.mubr.bf16.vlgmr.msra.gmra.mrb[4].mxu0 %v202_v42  ;;  %680 = vmatmul.mubr.bf16.vlgmr.msra.gmra.mrb[4].mxu1 %v204_v44 }
 0x10c   :  { %1269 = vmatpush3.bf16.msra.mxu0 %v1464_v41  ;;  %1289 = vmatpush3.bf16.msra.mxu1 %v1463_v46 }
 0x10d   :  { %1270 = vmatprep.subr.bf16.mxu0 %v1548_v4  ;;  %1290 = vmatprep.subr.bf16.mxu1 %v1548_v4 }
 0x10e   :  { %1304 = vmatprep.mubr.msk.bf16.mxu1 %vm1549_vm1, %v1548_v4  ;;  %1284 = vmatprep.mubr.msk.bf16.mxu0 %vm1549_vm1, %v1548_v4 }
 0x110   :  { %1271 = vmatpush3.bf16.msra.mxu0 %v1466_v47  ;;  %1291 = vmatpush3.bf16.msra.mxu1 %v1465_v48 }
 0x111   :  { %1272 = vmatprep.subr.bf16.mxu0 %v1548_v4  ;;  %1292 = vmatprep.subr.bf16.mxu1 %v1548_v4 }
 0x114   :  { %1273 = vmatpush3.bf16.msra.mxu0 %v1468_v49  ;;  %1293 = vmatpush3.bf16.msra.mxu1 %v1467_v50  ;;  %v46_v49 = vld [vmem:[#allocation4 + $0x340] sm:$0x2] }
 0x115   :  { %1274 = vmatprep.subr.bf16.mxu0 %v1548_v4  ;;  %1294 = vmatprep.subr.bf16.mxu1 %v1548_v4  ;;  %v47_v50 = vunpack.c.l.bf16 %v46_v49 }
 0x118   :  { %1275 = vmatpush3.bf16.msra.mxu0 %v1470_v51  ;;  %1295 = vmatpush3.bf16.msra.mxu1 %v1469_v52  ;;  %v1116_v51 = vsub.s32 2, %v1598_v13 }
 0x119   :  { %1276 = vmatprep.subr.bf16.mxu0 %v1548_v4  ;;  %1296 = vmatprep.subr.bf16.mxu1 %v1548_v4 }
 0x11c   :  { %1277 = vmatpush3.bf16.msra.mxu0 %v1472_v53  ;;  %1297 = vmatpush3.bf16.msra.mxu1 %v1471_v54 }
 0x11d   :  { %1278 = vmatprep.subr.bf16.mxu0 %v1548_v4  ;;  %1298 = vmatprep.subr.bf16.mxu1 %v1548_v4 }
 0x120   :  { %1279 = vmatpush3.bf16.msra.mxu0 %v1474_v55  ;;  %1299 = vmatpush3.bf16.msra.mxu1 %v1473_v56  ;;  %v1117_v55 = vrot.slane %v47_v50, %v1116_v51 }
 0x121   :  { %1280 = vmatprep.subr.bf16.mxu0 %v1548_v4  ;;  %1300 = vmatprep.subr.bf16.mxu1 %v1548_v4 }
 0x124   :  { %1301 = vmatpush3.bf16.msra.mxu1 %v1475_v57  ;;  %1281 = vmatpush3.bf16.msra.mxu0 %v1476_v58 }
 0x125   :  { %1302 = vmatprep.subr.bf16.mxu1 %v1548_v4  ;;  %1282 = vmatprep.subr.bf16.mxu0 %v1548_v4 }
 0x128   :  { %1303 = vmatpush3.bf16.msra.mxu1 %v1477_v59  ;;  %1283 = vmatpush3.bf16.msra.mxu0 %v1478_v60 }
 0x129   :  { %1328 = vmatprep.subr.bf16.mxu1 %v1548_v4  ;;  %1308 = vmatprep.subr.bf16.mxu0 %v1548_v4 }
 0x1de   :  { %v440_v0 = vpop.f32.mrb[4].mxu0  ;;  %v681_v8 = vpop.f32.mrb[4].mxu1 }
 0x1df   :  { %v441_v1 = vadd.f32 %v440_v0, %v241_v62  ;;  %v442_v2 = vpop.f32.mrb[5].mxu0  ;;  %v683_v11 = vpop.f32.mrb[5].mxu1  ;;  %v682_v36 = vadd.f32 %v681_v8, %v482_v32 }
 0x1e0   :  { %v443_v3 = vadd.f32 %v442_v2, %v245_v63  ;;  %v444_v5 = vpop.f32.mrb[6].mxu0  ;;  %v685_v20 = vpop.f32.mrb[6].mxu1  ;;  %v684_v33 = vadd.f32 %v683_v11, %v486_v29 }
 0x1e1   :  { %v688_v6 = vmax.f32 %v441_v1, 0.0  ;;  %v445_v7 = vpop.f32.mrb[7].mxu0  ;;  %v686_v23 = vpop.f32.mrb[7].mxu1  ;;  %v692_v19 = vmax.f32 %v682_v36, 0.0 }
 0x1e2   :  { %v689_v9 = vmax.f32 %v443_v3, 0.0  ;;  %v693_v21 = vmax.f32 %v684_v33, 0.0 }
 0x1e3   :  { %v690_v12 = vpack.c.bf16 %v688_v6, %v688_v6  ;;  %v694_v39 = vpack.c.bf16 %v692_v19, %v692_v19 }
 0x1e4   :  { %v691_v22 = vpack.c.bf16 %v689_v9, %v689_v9  ;;  %v695_v38 = vpack.c.bf16 %v693_v21, %v693_v21 }
 0x1e5   :  { %1305 = vmatmul.mubr.bf16.vlgmr.msra.gmra.mrb[8].mxu1 %v690_v12 }
 0x1e6   :  { %1329 = vmatpush3.bf16.msra.mxu1 %v1479_v10  ;;  %1285 = vmatmul.mubr.bf16.vlgmr.msra.gmra.mrb[8].mxu0 %v691_v22 }
 0x1e7   :  { %1309 = vmatpush3.bf16.msra.mxu0 %v1480_v16  ;;  %1330 = vmatprep.subr.bf16.mxu1 %v1548_v4 }
 0x1e8   :  { %1310 = vmatprep.subr.bf16.mxu0 %v1548_v4  ;;  %1344 = vmatprep.mubr.msk.bf16.mxu1 %vm1549_vm1, %v1548_v4 }
 0x1e9   :  { %1324 = vmatprep.mubr.msk.bf16.mxu0 %vm1549_vm1, %v1548_v4 }
 0x1ea   :  { %1331 = vmatpush3.bf16.msra.mxu1 %v1481_v14 }
 0x1eb   :  { %1311 = vmatpush3.bf16.msra.mxu0 %v1482_v15  ;;  %1332 = vmatprep.subr.bf16.mxu1 %v1548_v4 }
 0x1ec   :  { %1312 = vmatprep.subr.bf16.mxu0 %v1548_v4 }
 0x1ee   :  { %1333 = vmatpush3.bf16.msra.mxu1 %v1483_v18 }
 0x1ef   :  { %1313 = vmatpush3.bf16.msra.mxu0 %v1484_v24  ;;  %1334 = vmatprep.subr.bf16.mxu1 %v1548_v4 }
 0x1f0   :  { %1314 = vmatprep.subr.bf16.mxu0 %v1548_v4 }
 0x1f2   :  { %1335 = vmatpush3.bf16.msra.mxu1 %v1485_v25 }
 0x1f3   :  { %1315 = vmatpush3.bf16.msra.mxu0 %v1486_v26  ;;  %1336 = vmatprep.subr.bf16.mxu1 %v1548_v4 }
 0x1f4   :  { %1316 = vmatprep.subr.bf16.mxu0 %v1548_v4 }
 0x1f6   :  { %1337 = vmatpush3.bf16.msra.mxu1 %v1487_v27 }
 0x1f7   :  { %1317 = vmatpush3.bf16.msra.mxu0 %v1488_v28  ;;  %1338 = vmatprep.subr.bf16.mxu1 %v1548_v4 }
 0x1f8   :  { %1318 = vmatprep.subr.bf16.mxu0 %v1548_v4 }
 0x1fa   :  { %1339 = vmatpush3.bf16.msra.mxu1 %v1489_v30 }
 0x1fb   :  { %1319 = vmatpush3.bf16.msra.mxu0 %v1490_v31  ;;  %1340 = vmatprep.subr.bf16.mxu1 %v1548_v4 }
 0x1fc   :  { %1320 = vmatprep.subr.bf16.mxu0 %v1548_v4 }
 0x1fe   :  { %1341 = vmatpush3.bf16.msra.mxu1 %v1491_v34 }
 0x1ff   :  { %1321 = vmatpush3.bf16.msra.mxu0 %v1492_v35  ;;  %1342 = vmatprep.subr.bf16.mxu1 %v1548_v4 }
 0x200   :  { %1322 = vmatprep.subr.bf16.mxu0 %v1548_v4 }
 0x202   :  { %1343 = vmatpush3.bf16.msra.mxu1 %v1493_v37 }
 0x203   :  { %1323 = vmatpush3.bf16.msra.mxu0 %v1494_v17 }
 0x205   :  { %1345 = vmatmul.mubr.bf16.vlgmr.msra.gmra.mrb[12].mxu1 %v695_v38 }
 0x206   :  { %1325 = vmatmul.mubr.bf16.vlgmr.msra.gmra.mrb[12].mxu0 %v694_v39 }
 0x2b8   :  { %v898_v40 = vpop.f32.mrb[8].mxu1 }
 0x2b9   :  { %v810_v41 = vpop.f32.mrb[8].mxu0  ;;  %v1306_v42 = vpop.f32.mrb[9].mxu1 }
 0x2ba   :  { %v899_v43 = vadd.f32 %v898_v40, %v810_v41  ;;  %v1286_v44 = vpop.f32.mrb[9].mxu0  ;;  %v901_v45 = vpop.f32.mrb[10].mxu1 }
 0x2bb   :  { %v813_v46 = vpop.f32.mrb[10].mxu0  ;;  %v1307_v47 = vpop.f32.mrb[11].mxu1 }
 0x2bc   :  { %v1287_v48 = vpop.f32.mrb[11].mxu0 }
 0x2d8   :  { %v1107_v4 = vpop.f32.mrb[12].mxu1 }
 0x2d9   :  { %v1002_v52 = vpop.f32.mrb[12].mxu0  ;;  %v1346_v53 = vpop.f32.mrb[13].mxu1 }
 0x2da   :  { %v1008_v54 = vadd.f32 %v1002_v52, %v899_v43  ;;  %v1326_v56 = vpop.f32.mrb[13].mxu0  ;;  %v1110_v57 = vpop.f32.mrb[14].mxu1 }
 0x2db   :  { %v1005_v58 = vpop.f32.mrb[14].mxu0  ;;  %v1347_v59 = vpop.f32.mrb[15].mxu1 }
 0x2dc   :  { %v1113_v60 = vadd.f32 %v1107_v4, %v1008_v54  ;;  %v1327_v61 = vpop.f32.mrb[15].mxu0 }
 0x2de   :  { %v1118_v62 = vadd.f32 %v1117_v55, %v1113_v60 }
 0x2e0   :  { %1119 = vst [vmem:[%s1670_s2] sm:$0xff] %v1118_v62 }
 0x2e1   :  { %1124 = vsyncpa [#allocation3], 1 }
 0x2e2   :  { %1125 = vsyncpa [#allocation5], 1 }

</bundles_post_ra>
